<compile_context>
chip_gen: v7x
topology: tpu7x:2x2x1
jax: 0.10.0
libtpu: 0.0.40
codegen_flags: <defaults>
</compile_context>

<pallas_src>
import jax
import jax.numpy as jnp
from jax import lax
from jax.experimental import pallas as pl
from jax.experimental.pallas import tpu as pltpu


def _round_up(x, m):
    return ((x + m - 1) // m) * m


def _knn_kernel(q_ref, xt_ref, x2_ref, lab_ref, out_ref, min_ref, minlab_ref):
    j = pl.program_id(1)

    # Initialize the running reduction at the first M tile of each query tile.
    @pl.when(j == 0)
    def _():
        min_ref[...] = jnp.full(min_ref.shape, jnp.inf, dtype=jnp.float32)
        minlab_ref[...] = jnp.zeros(minlab_ref.shape, dtype=jnp.float32)

    q = q_ref[...]        # (tN, D)
    xt = xt_ref[...]      # (D, tM)   pre-transposed data tile
    x2 = x2_ref[...]      # (1, tM)   precomputed ||x||^2 (+inf on padded cols)
    lab = lab_ref[...]    # (1, tM)

    # MXU: cross term q @ x^T for this (query tile, data tile) pair.
    cross = jnp.dot(q, xt, preferred_element_type=jnp.float32)     # (tN, tM)
    # Per-row constant ||q||^2 dropped; argmin over M is unchanged.
    score = x2 - 2.0 * cross                                        # (tN, tM)

    # Within-tile k=1: first-occurrence argmin, fused one-hot gather of the
    # min score and its label (same select mask reused for both).
    idx = jnp.argmin(score, axis=-1)                                # (tN,)
    col = lax.broadcasted_iota(jnp.int32, score.shape, 1)           # (tN, tM)
    sel = col == idx[:, None]
    tile_min = jnp.sum(jnp.where(sel, score, 0.0), axis=-1, keepdims=True)  # (tN, 1)
    tile_lab = jnp.sum(jnp.where(sel, lab, 0.0), axis=-1, keepdims=True)    # (tN, 1)

    # Cross-tile online update.  Strict '<' keeps the earliest index on ties.
    better = tile_min < min_ref[...]
    min_ref[...] = jnp.where(better, tile_min, min_ref[...])
    minlab_ref[...] = jnp.where(better, tile_lab, minlab_ref[...])

    # Finalize: with k=1, votes-argmax == (nearest label == 1), ties -> class 0.
    @pl.when(j == pl.num_programs(1) - 1)
    def _():
        out_ref[...] = (minlab_ref[...] == 1.0).astype(jnp.float32)


def knn_forward(queries, data, labels, *, tn=128, tm=512):
    """Pallas equivalent of kNN.forward. Returns (predictions (N,1) f32, 0).

    Default tiles (tn=128, tm=512) are safe on v5e/v6e/v7x VMEM budgets; on
    v6e feel free to raise tm to 1024-2048, on v7x keep tm <= ~1024.
    """
    queries = jnp.asarray(queries, jnp.float32)
    data = jnp.asarray(data, jnp.float32)
    labels = jnp.asarray(labels, jnp.float32).reshape(-1)

    N, D = queries.shape
    M, D2 = data.shape
    assert D == D2 and labels.shape[0] == M

    # Hoisted out of the kernel loop: ||x||^2 once, data transposed to (D, M)
    # so the MXU contraction is a plain (tN,D)x(D,tM) matmul (no RHS relayout).
    x2 = jnp.sum(data * data, axis=-1)      # (M,)
    xt = data.T                             # (D, M), M lane-dense

    # Tile sizes clipped for small problems, keeping (8, 128) alignment.
    tn_eff = min(tn, _round_up(N, 8))
    tn_eff = _round_up(tn_eff, 8)
    n_pad = _round_up(N, tn_eff)
    tm_eff = min(tm, _round_up(M, 128))
    tm_eff = _round_up(tm_eff, 128)
    m_pad = _round_up(M, tm_eff)

    q_p = jnp.zeros((n_pad, D), jnp.float32).at[:N, :].set(queries)
    xt_p = jnp.zeros((D, m_pad), jnp.float32).at[:, :M].set(xt)
    # Padded columns get +inf squared norm so they never win the argmin.
    x2_p = jnp.full((1, m_pad), jnp.inf, jnp.float32).at[0, :M].set(x2)
    lab_p = jnp.zeros((1, m_pad), jnp.float32).at[0, :M].set(labels)

    grid = (n_pad // tn_eff, m_pad // tm_eff)   # (query tiles, data tiles) — reduction last

    preds_p = pl.pallas_call(
        _knn_kernel,
        out_shape=jax.ShapeDtypeStruct((n_pad, 1), jnp.float32),
        grid_spec=pltpu.PrefetchScalarGridSpec(
            num_scalar_prefetch=0,
            grid=grid,
            in_specs=[
                pl.BlockSpec((tn_eff, D), lambda i, j: (i, 0)),     # queries
                pl.BlockSpec((D, tm_eff), lambda i, j: (0, j)),     # data^T stream
                pl.BlockSpec((1, tm_eff), lambda i, j: (0, j)),     # ||x||^2 stream
                pl.BlockSpec((1, tm_eff), lambda i, j: (0, j)),     # labels stream
            ],
            out_specs=pl.BlockSpec((tn_eff, 1), lambda i, j: (i, 0)),
            scratch_shapes=[
                pltpu.VMEM((tn_eff, 1), jnp.float32),   # running min score
                pltpu.VMEM((tn_eff, 1), jnp.float32),   # running min label
            ],
        ),
        compiler_params=pltpu.CompilerParams(
            dimension_semantics=("parallel", "arbitrary")),
    )(q_p, xt_p, x2_p, lab_p)

    return preds_p[:N, :], 0


def _reference(queries, data, labels):
    d = jnp.sqrt(jnp.maximum(
        jnp.sum((queries[:, None, :] - data[None, :, :]) ** 2, axis=-1), 0.0))
    idx = jnp.argmin(d, axis=-1)
    nn_lab = labels[idx]
    votes0 = (nn_lab == 0).astype(jnp.int32)
    votes1 = (nn_lab == 1).astype(jnp.int32)
    pred = jnp.argmax(jnp.stack([votes0, votes1], axis=-1), axis=-1)
    return pred[:, None].astype(jnp.float32)


if __name__ == "__main__":
    key = jax.random.PRNGKey(0)
    k1, k2, k3, k4, k5, k6 = jax.random.split(key, 6)

    # Test 1: small single-tile case (matches the module's toy shapes).
    N, M, D = 8, 16, 32
    data = jax.random.normal(k1, (M, D), dtype=jnp.float32)          # "fit" data
    labels = jax.random.randint(k2, (M,), 0, 2).astype(jnp.float32)  # 0/1 labels
    queries = jax.random.normal(k3, (N, D), dtype=jnp.float32)

    preds, extra = knn_forward(queries, data, labels)
    preds = jax.block_until_ready(preds)
    ref = _reference(queries, data, labels)
    assert preds.shape == (N, 1) and preds.dtype == jnp.float32
    assert extra == 0
    assert jnp.array_equal(preds, ref), (preds, ref)

    # Test 2: ragged shapes exercising multi-tile streaming reduction + padding.
    N2, M2, D2 = 37, 300, 40
    data2 = jax.random.normal(k4, (M2, D2), dtype=jnp.float32)
    labels2 = jax.random.randint(k5, (M2,), 0, 2).astype(jnp.float32)
    queries2 = jax.random.normal(k6, (N2, D2), dtype=jnp.float32)

    preds2, _ = knn_forward(queries2, data2, labels2, tn=16, tm=128)
    preds2 = jax.block_until_ready(preds2)
    ref2 = _reference(queries2, data2, labels2)
    assert jnp.array_equal(preds2, ref2), (preds2, ref2)

    print("KERNEL_OK")
</pallas_src>

<mosaic_0001>
module attributes {stable_mosaic.version = 11 : i64} {
  func.func @_knn_kernel(%arg0: i32, %arg1: i32, %arg2: memref<8x32xf32, #tpu.memory_space<vmem>>, %arg3: memref<32x128xf32, #tpu.memory_space<vmem>>, %arg4: memref<1x128xf32, #tpu.memory_space<vmem>>, %arg5: memref<1x128xf32, #tpu.memory_space<vmem>>, %arg6: memref<8x1xf32, #tpu.memory_space<vmem>>, %arg7: memref<8x1xf32, #tpu.memory_space<vmem>>, %arg8: memref<8x1xf32, #tpu.memory_space<vmem>>) attributes {dimension_semantics = [#tpu.dimension_semantics<parallel>, #tpu.dimension_semantics<arbitrary>], iteration_bounds = array<i64: 1, 1>, scalar_prefetch = 0 : i64, scratch_operands = 2 : i64, tpu.core_type = #tpu.core_type<tc>, window_params = [{transform_indices = @transform_0, window_bounds = array<i64: 8, 32>}, {transform_indices = @transform_1, window_bounds = array<i64: 32, 128>}, {transform_indices = @transform_2, window_bounds = array<i64: 1, 128>}, {transform_indices = @transform_3, window_bounds = array<i64: 1, 128>}, {transform_indices = @transform_4, window_bounds = array<i64: 8, 1>}]} {
    %c0_i32 = arith.constant 0 : i32
    %0 = arith.cmpi eq, %arg1, %c0_i32 : i32
    %1 = arith.extui %0 : i1 to i32
    %c0_i32_0 = arith.constant 0 : i32
    %2 = arith.cmpi ne, %1, %c0_i32_0 : i32
    scf.if %2 {
      %cst_25 = arith.constant 0x7F800000 : f32
      %38 = vector.broadcast %cst_25 : f32 to vector<8x1xf32>
      %c0_26 = arith.constant 0 : index
      %c0_27 = arith.constant 0 : index
      %39 = vector.load %arg7[%c0_26, %c0_27] : memref<8x1xf32, #tpu.memory_space<vmem>>, vector<8x1xf32>
      tpu.vector_store %arg7[%c0_26, %c0_27], %38 {strides = array<i32>} : memref<8x1xf32, #tpu.memory_space<vmem>>, vector<8x1xf32>,
      %cst_28 = arith.constant 0.000000e+00 : f32
      %40 = vector.broadcast %cst_28 : f32 to vector<8x1xf32>
      %c0_29 = arith.constant 0 : index
      %c0_30 = arith.constant 0 : index
      %41 = vector.load %arg8[%c0_29, %c0_30] : memref<8x1xf32, #tpu.memory_space<vmem>>, vector<8x1xf32>
      tpu.vector_store %arg8[%c0_29, %c0_30], %40 {strides = array<i32>} : memref<8x1xf32, #tpu.memory_space<vmem>>, vector<8x1xf32>,
    } else {
    }
    %c0 = arith.constant 0 : index
    %c0_1 = arith.constant 0 : index
    %3 = vector.load %arg2[%c0, %c0_1] : memref<8x32xf32, #tpu.memory_space<vmem>>, vector<8x32xf32>
    %c0_2 = arith.constant 0 : index
    %c0_3 = arith.constant 0 : index
    %4 = vector.load %arg3[%c0_2, %c0_3] : memref<32x128xf32, #tpu.memory_space<vmem>>, vector<32x128xf32>
    %c0_4 = arith.constant 0 : index
    %c0_5 = arith.constant 0 : index
    %5 = vector.load %arg4[%c0_4, %c0_5] : memref<1x128xf32, #tpu.memory_space<vmem>>, vector<1x128xf32>
    %c0_6 = arith.constant 0 : index
    %c0_7 = arith.constant 0 : index
    %6 = vector.load %arg5[%c0_6, %c0_7] : memref<1x128xf32, #tpu.memory_space<vmem>>, vector<1x128xf32>
    %cst = arith.constant dense<0.000000e+00> : vector<8x128xf32>
    %7 = tpu.matmul %3, %4, %cst {dimension_numbers = #tpu.dot_dimension_numbers<[1], [0], [0], [1], [0, 0, 1, 1], [], []>} : vector<8x32xf32>, vector<32x128xf32>, vector<8x128xf32> -> vector<8x128xf32>
    %cst_8 = arith.constant 2.000000e+00 : f32
    %8 = vector.broadcast %cst_8 : f32 to vector<8x128xf32>
    %9 = arith.mulf %8, %7 : vector<8x128xf32>
    %10 = vector.broadcast %5 : vector<1x128xf32> to vector<8x128xf32>
    %11 = arith.subf %10, %9 : vector<8x128xf32>
    %12 = tpu.reduce_index %11 {axis = 1 : i32, kind = #tpu.reduction_kind<arg_min>} : vector<8x128xf32> -> vector<8xi32>
    %13 = tpu.iota {dimensions = array<i32: 1>} : vector<8x128xi32>
    %14 = vector.shape_cast %12 : vector<8xi32> to vector<8x1xi32>
    %15 = vector.broadcast %14 : vector<8x1xi32> to vector<8x128xi32>
    %16 = arith.cmpi eq, %13, %15 : vector<8x128xi32>
    %cst_9 = arith.constant 0.000000e+00 : f32
    %17 = vector.broadcast %cst_9 : f32 to vector<8x128xf32>
    %18 = arith.select %16, %11, %17 : vector<8x128xi1>, vector<8x128xf32>
    %cst_10 = arith.constant dense<0.000000e+00> : vector<8xf32>
    %19 = vector.multi_reduction <add>, %18, %cst_10 [1] : vector<8x128xf32> to vector<8xf32>
    %20 = vector.shape_cast %19 : vector<8xf32> to vector<8x1xf32>
    %cst_11 = arith.constant 0.000000e+00 : f32
    %21 = vector.shape_cast %6 : vector<1x128xf32> to vector<1x128xf32>
    %22 = vector.broadcast %21 : vector<1x128xf32> to vector<8x128xf32>
    %23 = vector.broadcast %cst_11 : f32 to vector<8x128xf32>
    %24 = arith.select %16, %22, %23 : vector<8x128xi1>, vector<8x128xf32>
    %cst_12 = arith.constant dense<0.000000e+00> : vector<8xf32>
    %25 = vector.multi_reduction <add>, %24, %cst_12 [1] : vector<8x128xf32> to vector<8xf32>
    %26 = vector.shape_cast %25 : vector<8xf32> to vector<8x1xf32>
    %c0_13 = arith.constant 0 : index
    %c0_14 = arith.constant 0 : index
    %27 = vector.load %arg7[%c0_13, %c0_14] : memref<8x1xf32, #tpu.memory_space<vmem>>, vector<8x1xf32>
    %28 = arith.cmpf olt, %20, %27 : vector<8x1xf32>
    %c0_15 = arith.constant 0 : index
    %c0_16 = arith.constant 0 : index
    %29 = vector.load %arg7[%c0_15, %c0_16] : memref<8x1xf32, #tpu.memory_space<vmem>>, vector<8x1xf32>
    %30 = arith.select %28, %20, %29 : vector<8x1xi1>, vector<8x1xf32>
    %c0_17 = arith.constant 0 : index
    %c0_18 = arith.constant 0 : index
    %31 = vector.load %arg7[%c0_17, %c0_18] : memref<8x1xf32, #tpu.memory_space<vmem>>, vector<8x1xf32>
    tpu.vector_store %arg7[%c0_17, %c0_18], %30 {strides = array<i32>} : memref<8x1xf32, #tpu.memory_space<vmem>>, vector<8x1xf32>,
    %c0_19 = arith.constant 0 : index
    %c0_20 = arith.constant 0 : index
    %32 = vector.load %arg8[%c0_19, %c0_20] : memref<8x1xf32, #tpu.memory_space<vmem>>, vector<8x1xf32>
    %33 = arith.select %28, %26, %32 : vector<8x1xi1>, vector<8x1xf32>
    %c0_21 = arith.constant 0 : index
    %c0_22 = arith.constant 0 : index
    %34 = vector.load %arg8[%c0_21, %c0_22] : memref<8x1xf32, #tpu.memory_space<vmem>>, vector<8x1xf32>
    tpu.vector_store %arg8[%c0_21, %c0_22], %33 {strides = array<i32>} : memref<8x1xf32, #tpu.memory_space<vmem>>, vector<8x1xf32>,
    %c0_i32_23 = arith.constant 0 : i32
    %35 = arith.cmpi eq, %arg1, %c0_i32_23 : i32
    %36 = arith.extui %35 : i1 to i32
    %c0_i32_24 = arith.constant 0 : i32
    %37 = arith.cmpi ne, %36, %c0_i32_24 : i32
    scf.if %37 {
      %c0_25 = arith.constant 0 : index
      %c0_26 = arith.constant 0 : index
      %38 = vector.load %arg8[%c0_25, %c0_26] : memref<8x1xf32, #tpu.memory_space<vmem>>, vector<8x1xf32>
      %cst_27 = arith.constant 1.000000e+00 : f32
      %39 = vector.broadcast %cst_27 : f32 to vector<8x1xf32>
      %40 = arith.cmpf oeq, %38, %39 : vector<8x1xf32>
      %41 = arith.extui %40 : vector<8x1xi1> to vector<8x1xi32>
      %42 = arith.sitofp %41 : vector<8x1xi32> to vector<8x1xf32>
      %c0_28 = arith.constant 0 : index
      %c0_29 = arith.constant 0 : index
      %43 = vector.load %arg6[%c0_28, %c0_29] : memref<8x1xf32, #tpu.memory_space<vmem>>, vector<8x1xf32>
      tpu.vector_store %arg6[%c0_28, %c0_29], %42 {strides = array<i32>} : memref<8x1xf32, #tpu.memory_space<vmem>>, vector<8x1xf32>,
    } else {
    }
    return
  }
  func.func @transform_0(%arg0: i32, %arg1: i32) -> (i32, i32) {
    %c0_i32 = arith.constant 0 : i32
    %c0_i32_0 = arith.constant 0 : i32
    return %arg0, %c0_i32 : i32, i32
  }
  func.func @transform_1(%arg0: i32, %arg1: i32) -> (i32, i32) {
    %c0_i32 = arith.constant 0 : i32
    %c0_i32_0 = arith.constant 0 : i32
    return %c0_i32, %arg1 : i32, i32
  }
  func.func @transform_2(%arg0: i32, %arg1: i32) -> (i32, i32) {
    %c0_i32 = arith.constant 0 : i32
    %c0_i32_0 = arith.constant 0 : i32
    return %c0_i32, %arg1 : i32, i32
  }
  func.func @transform_3(%arg0: i32, %arg1: i32) -> (i32, i32) {
    %c0_i32 = arith.constant 0 : i32
    %c0_i32_0 = arith.constant 0 : i32
    return %c0_i32, %arg1 : i32, i32
  }
  func.func @transform_4(%arg0: i32, %arg1: i32) -> (i32, i32) {
    %c0_i32 = arith.constant 0 : i32
    %c0_i32_0 = arith.constant 0 : i32
    return %arg0, %c0_i32 : i32, i32
  }
}

</mosaic_0001>

<bundles_post_ra>
// kernel: tpu_custom_call.1
= control target key start
LH: loop header
LB: loop body
LE: loop exit
PB: predicated region body
PF: predicated region fallthrough
CT: control target
= control target key end

     0   :  { %9 = vsyncpa [#allocation5], 0  ;;  %s338_s0 = inlined_call_operand.hbm [shape: f32[8,32], index: 0, kind: input, shape index: {}]   ;;  %s339_s1 = inlined_call_operand.hbm [shape: f32[32,128], index: 1, kind: input, shape index: {}]   ;;  %s340_s2 = inlined_call_operand.vmem [shape: f32[1,128], index: 2, kind: input, shape index: {}]   ;;  %s341_s3 = inlined_call_operand.vmem [shape: f32[1,128], index: 3, kind: input, shape index: {}]   ;;  %s342_s4 = inlined_call_operand.vmem [shape: f32[8,1], index: 4, kind: output, shape index: {}]  }
   0x1   :  { %10 = vsyncpa [#allocation7], 0  ;;  %s260_s15 = smov [#allocation4]   ;;  %s261_s17 = smov [#allocation6]  }
   0x2   :  { %s17_s16 = sshll.u32 %s260_s15, 4  ;;  %s26_s18 = sshll.u32 %s261_s17, 4  ;;  %s18_s16 = int_to_ptr.vmem [resolvable:$true] %s17_s16  ;;  %s293_s18 = int_to_ptr.vmem [resolvable:$true] %s26_s18 }
   0x3   :  { %s212_s21 = scalar_lea.hbm %s338_s0, 128 }
   0x4   :  { %p213_p0 = scmp.ne.s32.totalorder %s338_s0, %s212_s21  ;;  %p216_p1 = scmp.lt.u32.totalorder %s212_s21, %s338_s0 }
   0x6   :  { %p218_p2 = pnand %p216_p1, %p213_p0 }
   0x8   :  { %221 = shalt.err (!%p218_p2)
}
   0x9   :  { %s222_s26 = scalar_lea.vmem %s18_s16, 128  ;;  %p227_p4 = scmp.lt.s32.totalorder %s18_s16, %s18_s16 }
   0xa   :  { %p223_p3 = scmp.ne.s32.totalorder %s18_s16, %s222_s26  ;;  %p228_p5 = scmp.lt.s32.totalorder %s222_s26, %s222_s26 }
   0xc   :  { %p229_p6 = por %p228_p5, %p227_p4 }
   0xe   :  { %p230_p7 = pnand %p229_p6, %p223_p3 }
  0x10   :  { %233 = shalt.err (!%p230_p7)
}
  0x11   :  { %20 = dma.hbm_to_vmem [thread:$0]  %s338_s0, 128, %s18_s16, [#allocation5]  }
  0x12   :  { %s234_s5 = scalar_lea.hbm %s339_s1, 512 }
  0x13   :  { %p235_p8 = scmp.ne.s32.totalorder %s339_s1, %s234_s5  ;;  %p238_p9 = scmp.lt.u32.totalorder %s234_s5, %s339_s1 }
  0x15   :  { %p240_p10 = pnand %p238_p9, %p235_p8 }
  0x17   :  { %243 = shalt.err (!%p240_p10)
}
  0x18   :  { %s244_s10 = scalar_lea.vmem %s293_s18, 512  ;;  %p249_p12 = scmp.lt.s32.totalorder %s293_s18, %s293_s18 }
  0x19   :  { %p245_p11 = scmp.ne.s32.totalorder %s293_s18, %s244_s10  ;;  %p250_p13 = scmp.lt.s32.totalorder %s244_s10, %s244_s10 }
  0x1b   :  { %p251_p0 = por %p250_p13, %p249_p12 }
  0x1d   :  { %p252_p1 = pnand %p251_p0, %p245_p11 }
  0x1f   :  { %255 = shalt.err (!%p252_p1)
}
  0x20   :  { %s262_s0 = smov 128   ;;  %s263_s11 = smov 8  }
  0x21   :  { %32 = dma.hbm_to_vmem [thread:$0]  %s339_s1, 512, %s293_s18, [#allocation7], %s262_s0, %s262_s0, %s263_s11  }
  0x22   :  { %256 = dma.done.wait [#allocation5], 128  }
  0x23   :  { %257 = vsyncadd [#allocation5], 4294967168 }
  0x24   :  { %258 = dma.done.wait [#allocation7], 512  }
  0x25   :  { %259 = vsyncadd [#allocation7], 4294966784  ;;  %vm47_vm0 = vcmask 7168   ;;  %v264_v0 = vmov 0.0|0.0   ;;  %v265_v1 = vmov 0.0   ;;  %vm266_vm1 = vmmov 0  }
  0x26   :  { %198 = vmatprep.subr.bf16.mxu0 %v264_v0  ;;  %49 = vst.msk [vmem:[#allocation3] sm:$0xff] %vm47_vm0, %v265_v1  ;;  %195 = vmatprep.mubr.msk.f32.mxu0 %vm266_vm1, %v265_v1  ;;  %v51_v2 = vld [vmem:[#allocation6] sm:$0xff]  ;;  %v52_v3 = vld [vmem:[#allocation6 + $0x8] sm:$0xff]  ;;  %v53_v4 = vld [vmem:[#allocation6 + $0x10] sm:$0xff]  ;;  %vm57_vm2 = vcmask 261120   ;;  %v141_v14 = vlaneseq  ;;  %v267_v20 = vmov inf  }
  0x27   :  { %v199_v5 = vpack.c.bf16 %v52_v3, %v51_v2  ;;  %v54_v6 = vld [vmem:[#allocation6 + $0x18] sm:$0xff]  ;;  %v179_v10 = vld [vmem:[%s340_s2] ss:$0 sm:$0xff]  ;;  %48 = vst.msk [vmem:[#allocation2] sm:$0xff] %vm47_vm0, %v267_v20 }
  0x28   :  { %v202_v7 = vpack.c.bf16 %v54_v6, %v53_v4  ;;  %v50_v8 = vld [vmem:[#allocation4] sm:$0xff]  ;;  %v142_v15 = vand.u32 127, %v141_v14  ;;  %v180_v16 = vld [vmem:[%s341_s3] ss:$0 sm:$0xff] }
  0x29   :  { %200 = vmatpush3.bf16.msra.mxu0 %v199_v5 }
  0x2a   :  { %201 = vmatprep.subr.bf16.mxu0 %v264_v0 }
  0x2d   :  { %203 = vmatpush3.bf16.msra.mxu0 %v202_v7  ;;  %v161_v22 = vld [vmem:[#allocation3] sm:$0xff] }
  0x2e   :  { %v156_v21 = vld [vmem:[#allocation2] sm:$0xff] }
  0x30   :  { %196 = vmatmul.mubr.msk.f32.vlgmr.msra.gmra.mrb[0].mxu0 %vm57_vm2, %v50_v8 }
 0x103   :  { %v127_v9 = vpop.f32.mrb[0].mxu0 }
 0x104   :  { %v131_v11 = vmul.f32 2.0, %v127_v9  ;;  %v197_v12 = vpop.f32.mrb[1].mxu0 }
 0x106   :  { %v138_v13 = vsub.f32 %v179_v10, %v131_v11 }
 0x108   :  { %139 = vmin.index.xlane.f32.xlu0 %v138_v13 }
 0x195   :  { %v140_v17 = vpop.xlane.xlu0 %139 }
 0x196   :  { %vm143_vm3 = vcmp.eq.s32.totalorder %v142_v15, %v140_v17 }
 0x197   :  { %v153_v18 = vsel %vm143_vm3, %v180_v16, 0.0  ;;  %v144_v19 = vsel %vm143_vm3, %v138_v13, 0.0 }
 0x198   :  { %154 = vadd.xlane.f32.xlu1 %v153_v18  ;;  %145 = vadd.xlane.f32.xlu0 %v144_v19 }
 0x225   :  { %v155_v23 = vpop.xlane.xlu1 %154  ;;  %v146_v24 = vpop.xlane.xlu0 %145 }
 0x226   :  { %vm157_vm4 = vcmp.lt.f32.partialorder %v146_v24, %v156_v21 }
 0x227   :  { %v158_v25 = vsel %vm157_vm4, %v146_v24, %v156_v21  ;;  %v162_v26 = vsel %vm157_vm4, %v155_v23, %v161_v22 }
 0x228   :  { %160 = vst.msk [vmem:[#allocation2] sm:$0xff] %vm47_vm0, %v158_v25  ;;  %163 = vst.msk [vmem:[#allocation3] sm:$0xff] %vm47_vm0, %v162_v26 }
 0x22f   :  { %v167_v27 = vld [vmem:[#allocation3] sm:$0xff] }
 0x230   :  { %vm168_vm5 = vcmp.eq.f32.partialorder %v167_v27, 1.0 }
 0x231   :  { %v181_v28 = vsel %vm168_vm5, 1.0, %v265_v1 }
 0x232   :  { %171 = vst.msk [vmem:[%s342_s4] sm:$0xff] %vm47_vm0, %v181_v28 }
 0x233   :  { %176 = vsyncpa [#allocation5], 1 }
 0x234   :  { %177 = vsyncpa [#allocation7], 1 }

</bundles_post_ra>
